<compile_context>
chip_gen: v7x
topology: tpu7x:2x2x1
jax: 0.10.0
libtpu: 0.0.40
codegen_flags: <defaults>
</compile_context>

<pallas_src>
import jax
import jax.numpy as jnp
from jax.experimental import pallas as pl
from jax.experimental.pallas import tpu as pltpu


_LANE_CANDIDATES = (1024, 512, 256, 128)


def _round_up(x: int, m: int) -> int:
    return ((x + m - 1) // m) * m


def _default_max_block_rows() -> int:
    """Generation-aware default block height (rows of the lane-dense slab)."""
    try:
        kind = jax.devices()[0].device_kind.lower()
    except Exception:
        return 512
    if "v7" in kind:
        return 2048          # ~8 MiB f32 block; amortizes per-step overhead @3.2 TB/s
    if "v6" in kind:
        return 1024          # ~4 MiB f32 block; well under 32 MiB default scoped VMEM
    return 512               # v5e / others: 8 MiB total footprint, under 16 MiB default


def _int_pow(x, n: int):
    """x**n for static integer n >= 0, via exponentiation by squaring
    (unrolled at trace time -> a handful of VPU multiplies)."""
    if n == 0:
        return jnp.ones_like(x)
    result = None
    base = x
    while n:
        if n & 1:
            result = base if result is None else result * base
        n >>= 1
        if n:
            base = base * base
    return result


def _make_envelop_kernel(inv_cutoff: float, exponent: int):
    p = exponent + 1
    a = -(p + 1) * (p + 2) / 2.0
    b = float(p * (p + 2))
    c = -p * (p + 1) / 2.0

    def kernel(d_ref, o_ref):
        # Upcast to f32 in-kernel (free VALU filler; required on v5e anyway).
        d = d_ref[...].astype(jnp.float32)
        s = d * jnp.float32(inv_cutoff)
        # s^(p-1) by squaring; then Horner for the polynomial tail:
        #   a*s^(p-1) + b*s^p + c*s^(p+1) = s^(p-1) * (a + s*(b + c*s))
        pm1 = _int_pow(s, p - 1)
        poly = pm1 * (jnp.float32(a) + s * (jnp.float32(b) + jnp.float32(c) * s))
        # Exact division to stay within the 1e-5 accuracy budget.
        # TODO(synk): the PyTorch module applies no cutoff mask / d==0 guard,
        # so none is applied here either (ragged-tail garbage may produce inf,
        # but those lanes are masked out of the writeback).
        env = 1.0 / s + poly
        o_ref[...] = env.astype(o_ref.dtype)

    return kernel


def poly_envelop_pallas(distances: jax.Array, cutoff: float, exponent: int,
                        *, lanes: int | None = None,
                        max_block_rows: int | None = None) -> jax.Array:
    """Elementwise polynomial envelope. Accepts any shape / float dtype."""
    orig_shape = distances.shape
    x = jnp.asarray(distances)

    cast = False
    if x.dtype not in (jnp.float32, jnp.bfloat16, jnp.float16):
        x = x.astype(jnp.float32)        # matches torch: int / float -> float
        cast = True
    dtype = x.dtype
    itemsize = jnp.dtype(dtype).itemsize
    sub = (8 * 4) // itemsize            # sublane tiling: 8 (f32), 16 (bf16/f16)

    flat = x.reshape(-1)
    n = int(flat.shape[0])
    if n == 0:
        return flat.reshape(orig_shape)

    if max_block_rows is None:
        max_block_rows = _default_max_block_rows()

    # Lane count: prefer the largest candidate that divides n exactly (no pad,
    # no strip-back pass); otherwise 128 lanes so the one-off pad is <= 127 elems.
    if lanes is None:
        lanes = next((c for c in _LANE_CANDIDATES if n % c == 0), 128)
    padded_n = _round_up(n, lanes)
    pad = padded_n - n
    if pad:
        flat = jnp.pad(flat, (0, pad), constant_values=1.0)
    rows = padded_n // lanes
    x2d = flat.reshape(rows, lanes)

    # Block rows: multiple of the sublane tiling (or the full row extent for
    # tiny inputs), capped at max_block_rows. Guarantee >= 2 grid steps when
    # there is enough work so v7x gets both TensorCores busy.
    if rows <= sub:
        block_rows = rows
    else:
        block_rows = min(_round_up(rows, sub), max_block_rows)
        if pl.cdiv(rows, block_rows) < 2:
            block_rows = _round_up(pl.cdiv(rows, 2), sub)
    grid = (pl.cdiv(rows, block_rows),)

    block_bytes = block_rows * lanes * itemsize
    # 2 arrays x 2 pipeline buffers + headroom; never below the common default.
    vmem_limit = max(16 << 20, 4 * block_bytes + (2 << 20))

    kernel = _make_envelop_kernel(1.0 / cutoff, exponent)

    # Alias input->output only when x2d is a kernel-local temporary (fresh
    # buffer from pad/cast); saves one rows*lanes*itemsize HBM allocation.
    temp_input = bool(pad) or cast

    out2d = pl.pallas_call(
        kernel,
        out_shape=jax.ShapeDtypeStruct((rows, lanes), dtype),
        grid=grid,
        in_specs=[pl.BlockSpec((block_rows, lanes), lambda i: (i, 0))],
        out_specs=pl.BlockSpec((block_rows, lanes), lambda i: (i, 0)),
        compiler_params=pltpu.CompilerParams(
            dimension_semantics=("parallel",),
            vmem_limit_bytes=int(vmem_limit)),
        cost_estimate=pl.CostEstimate(
            flops=10 * rows * lanes,
            transcendentals=rows * lanes,       # the reciprocal
            bytes_accessed=2 * rows * lanes * itemsize,
        ),
        input_output_aliases={0: 0} if temp_input else {},
    )(x2d)

    out = out2d.reshape(-1)
    if pad:
        out = out[:n]
    return out.reshape(orig_shape)


def poly_envelop_ref(distances: jnp.ndarray, cutoff: float, exponent: int):
    inv_cutoff = 1.0 / cutoff
    p = exponent + 1
    a = -(p + 1) * (p + 2) / 2.0
    b = p * (p + 2)
    c = -p * (p + 1) / 2.0
    scaled = distances.astype(jnp.float32) * inv_cutoff
    return (1.0 / scaled + a * scaled ** (p - 1)
            + b * scaled ** p + c * scaled ** (p + 1))


if __name__ == "__main__":
    key = jax.random.PRNGKey(0)
    cutoff = 5.0
    exponent = 5  # typical DimeNet-style envelope exponent

    # 1) Small, non-aligned f32 tensor -> exercises the padded / strip-back
    #    fallback path (lanes=128, ragged last block).
    distances = jax.random.uniform(
        key, (6, 200), dtype=jnp.float32, minval=0.1, maxval=cutoff)
    out = jax.block_until_ready(poly_envelop_pallas(distances, cutoff, exponent))
    ref = poly_envelop_ref(distances, cutoff, exponent)
    assert out.shape == distances.shape and out.dtype == distances.dtype
    assert jnp.allclose(out, ref, rtol=1e-5, atol=1e-5), (
        float(jnp.max(jnp.abs(out - ref))))

    # 2) Flat edge-list style 1-D input, lane-aligned size -> no pad, no alias.
    d2 = jax.random.uniform(
        jax.random.PRNGKey(1), (4096,), dtype=jnp.float32,
        minval=0.1, maxval=cutoff)
    out2 = jax.block_until_ready(poly_envelop_pallas(d2, cutoff, exponent))
    ref2 = poly_envelop_ref(d2, cutoff, exponent)
    assert jnp.allclose(out2, ref2, rtol=1e-5, atol=1e-5), (
        float(jnp.max(jnp.abs(out2 - ref2))))

    # 3) Native bf16 path (16-sublane blocks, half the HBM bytes).
    d3 = jax.random.uniform(
        jax.random.PRNGKey(2), (512,), dtype=jnp.float32,
        minval=0.5, maxval=4.5).astype(jnp.bfloat16)
    out3 = jax.block_until_ready(poly_envelop_pallas(d3, cutoff, exponent))
    ref3 = poly_envelop_ref(d3.astype(jnp.float32), cutoff, exponent)
    assert out3.dtype == jnp.bfloat16
    assert jnp.allclose(out3.astype(jnp.float32), ref3, rtol=5e-2, atol=5e-2), (
        float(jnp.max(jnp.abs(out3.astype(jnp.float32) - ref3))))

    print("KERNEL_OK")
</pallas_src>

<mosaic_0001>
module attributes {stable_mosaic.version = 11 : i64} {
  func.func @kernel(%arg0: i32, %arg1: memref<8x128xf32, #tpu.memory_space<vmem>>, %arg2: memref<8x128xf32, #tpu.memory_space<vmem>>) attributes {dimension_semantics = [#tpu.dimension_semantics<parallel>], iteration_bounds = array<i64: 2>, scalar_prefetch = 0 : i64, scratch_operands = 0 : i64, tpu.core_type = #tpu.core_type<tc>, window_params = [{transform_indices = @transform_0, window_bounds = array<i64: 8, 128>}, {transform_indices = @transform_1, window_bounds = array<i64: 8, 128>}]} {
    %c0 = arith.constant 0 : index
    %c0_0 = arith.constant 0 : index
    %0 = vector.load %arg1[%c0, %c0_0] : memref<8x128xf32, #tpu.memory_space<vmem>>, vector<8x128xf32>
    %cst = arith.constant 2.000000e-01 : f32
    %1 = vector.broadcast %cst : f32 to vector<8x128xf32>
    %2 = arith.mulf %0, %1 : vector<8x128xf32>
    %3 = arith.mulf %2, %2 : vector<8x128xf32>
    %4 = arith.mulf %3, %3 : vector<8x128xf32>
    %5 = arith.mulf %2, %4 : vector<8x128xf32>
    %cst_1 = arith.constant -2.100000e+01 : f32
    %6 = vector.broadcast %cst_1 : f32 to vector<8x128xf32>
    %7 = arith.mulf %6, %2 : vector<8x128xf32>
    %cst_2 = arith.constant 4.800000e+01 : f32
    %8 = vector.broadcast %cst_2 : f32 to vector<8x128xf32>
    %9 = arith.addf %8, %7 : vector<8x128xf32>
    %10 = arith.mulf %2, %9 : vector<8x128xf32>
    %cst_3 = arith.constant -2.800000e+01 : f32
    %11 = vector.broadcast %cst_3 : f32 to vector<8x128xf32>
    %12 = arith.addf %11, %10 : vector<8x128xf32>
    %13 = arith.mulf %5, %12 : vector<8x128xf32>
    %cst_4 = arith.constant 1.000000e+00 : f32
    %14 = vector.broadcast %cst_4 : f32 to vector<8x128xf32>
    %15 = arith.divf %14, %2 : vector<8x128xf32>
    %16 = arith.addf %15, %13 : vector<8x128xf32>
    %c0_5 = arith.constant 0 : index
    %c0_6 = arith.constant 0 : index
    %17 = vector.load %arg2[%c0_5, %c0_6] : memref<8x128xf32, #tpu.memory_space<vmem>>, vector<8x128xf32>
    tpu.vector_store %arg2[%c0_5, %c0_6], %16 {strides = array<i32>} : memref<8x128xf32, #tpu.memory_space<vmem>>, vector<8x128xf32>,
    return
  }
  func.func @transform_0(%arg0: i32) -> (i32, i32) {
    %c0_i32 = arith.constant 0 : i32
    %c0_i32_0 = arith.constant 0 : i32
    return %arg0, %c0_i32 : i32, i32
  }
  func.func @transform_1(%arg0: i32) -> (i32, i32) {
    %c0_i32 = arith.constant 0 : i32
    %c0_i32_0 = arith.constant 0 : i32
    return %arg0, %c0_i32 : i32, i32
  }
}

</mosaic_0001>

<bundles_post_ra>
// kernel: tpu_custom_call.1
= control target key start
LH: loop header
LB: loop body
LE: loop exit
PB: predicated region body
PF: predicated region fallthrough
CT: control target
= control target key end

     0   :  { %6 = vsyncpa [#allocation3], 0  ;;  %s561_s0 = inlined_call_operand.hbm [shape: f32[10,128], index: 0, kind: input, shape index: {}, may-alias: {0,1}]   ;;  %s562_s1 = inlined_call_operand.hbm [shape: f32[10,128], index: 1, kind: output, shape index: {}, may-alias: {0,1}]  }
   0x1   :  { %8 = vsyncpa [#allocation3 + $0x1], 0 }
   0x2   :  { %9 = vsyncpa [#allocation4], 0 }
   0x3   :  { %11 = vsyncpa [#allocation4 + $0x1], 0  ;;  %s400_s6 = smov 0   ;;  %s402_s7 = smov 0  }
   0x4   :  { %s404_s8 = smov 0   ;;  %s406_s9 = smov 0  }
   0x5 LB: > { %s421_s10 = sadd.s32 4294967295, %s386_s9   ;;  %s230_s11 = sadd.s32 4294967294, %s386_s9   ;;  %s386_s9 = sphi %s406_s9, %s577_s9   ;;  %s382_s8 = sphi %s404_s8, %s576_s8   ;;  %s378_s7 = sphi %s402_s7, %s575_s7   ;;  %s374_s6 = sphi %s400_s6, %s574_s6  }
   0x6   : > { %s425_s12 = sadd.s32 1, %s386_s9   ;;  %s24_s13 = sadd.s32 1, %s382_s8 }
   0x7   : > { %s21_s14 = ssub.s32 %s386_s9, %s425_s12  ;;  %p31_p0 = scmp.ne.s32.totalorder %s382_s8, %s378_s7 }
   0x8   : > { %p22_p1 = scmp.eq.s32.totalorder %s21_s14, 0  ;;  %p32_p2 = scmp.eq.s32.totalorder %s386_s9, 0 }
   0x9   : > { %p37_p3 = scmp.ne.s32.totalorder %s378_s7, %s374_s6  ;;  %p38_p4 = scmp.eq.s32.totalorder %s421_s10, 0 }
   0xa   : > { %s437_s15 = scalar_select %p22_p1, %s382_s8, %s24_s13  }
   0xb   : > { %p439_p5 = por %p32_p2, %p31_p0  ;;  %p443_p6 = por %p38_p4, %p37_p3 }
   0xc   : > { %p61_p7 = scmp.eq.s32.totalorder %s421_s10, 1  ;;  %p67_p8 = scmp.eq.s32.totalorder %s230_s11, 1 }
   0xd   : > { %p254_p10 = scmp.lt.s32.totalorder %s386_s9, 2  ;;  %s87_s20 = sand.u32 1, %s382_s8  }
   0xe   : > { %p450_p11 = por %p61_p7, %p31_p0  ;;  %p454_p12 = por %p67_p8, %p37_p3 }
   0xf   : > { %s234_s21 = sshll.u32 %s386_s9, 7  ;;  %s233_s22 = sshll.u32 %s87_s20, 3 }
  0x10   : > { %s566_s18 = scalar_select %p450_p11, 1, 0 }
  0x11   : > { %s567_s19 = scalar_select %p454_p12, 1, 0 }
  0x12   : > { %s463_s25 = scalar_lea.hbm %s561_s0, %s234_s21  ;;  %s91_s26 = scalar_lea.vmem [#allocation2], %s233_s22 }
  0x13   : > { %s98_s27 = sshll.u32 %s91_s26, 4  ;;  %p467_p13 = pnand %p254_p10, %p439_p5  ;;  %s471_s27 = int_to_ptr.vmem [resolvable:$true] %s98_s27 }
  0x14   : > { %s88_s29 = scalar_lea.sflag [#allocation3], %s87_s20  ;;  %s290_s30 = scalar_lea.hbm %s463_s25, 128 }
  0x15   : > { %p291_p2 = scmp.ne.s32.totalorder %s463_s25, %s290_s30  ;;  %p292_p3 = pneg %p467_p13 }
  0x16   : > { %s295_s4 = scalar_lea.hbm %s561_s0, 256  ;;  %p296_p5 = scmp.lt.u32.totalorder %s463_s25, %s561_s0 }
  0x17   : > { %p293_p4 = pnand %p292_p3, %p291_p2  ;;  %p297_p8 = scmp.lt.u32.totalorder %s295_s4, %s290_s30 }
  0x18   : > { %p299_p9 = scmp.lt.u32.totalorder %s290_s30, %s463_s25 }
  0x19   : > { %p294_p7 = pneg %p293_p4  ;;  %p298_p10 = por %p297_p8, %p296_p5 }
  0x1b   : > { %p300_p0 = por %p299_p9, %p298_p10 }
  0x1d   : > { %p301_p1 = pnand %p300_p0, %p294_p7 }
  0x1f   : > { %304 = shalt.err (!%p301_p1)
}
  0x20   : > { %s305_s13 = scalar_lea.vmem %s471_s27, 128  ;;  %s388_s14 = smov [#allocation2]  }
  0x21   : > { %p306_p2 = scmp.ne.s32.totalorder %s471_s27, %s305_s13  ;;  %s310_s16 = sshll.u32 %s388_s14, 4  ;;  %s311_s16 = int_to_ptr.vmem [resolvable:$false] %s310_s16 }
  0x22   : > { %s312_s20 = scalar_lea.vmem %s311_s16, 256  ;;  %p313_p11 = scmp.lt.s32.totalorder %s471_s27, %s311_s16 }
  0x23   : > { %p308_p4 = pnand %p306_p2, %p292_p3  ;;  %p314_p5 = scmp.lt.s32.totalorder %s312_s20, %s305_s13 }
  0x25   : > { %p309_p12 = pneg %p308_p4  ;;  %p315_p8 = por %p314_p5, %p313_p11 }
  0x27   : > { %p316_p9 = pnand %p315_p8, %p309_p12 }
  0x29   : > { %319 = shalt.err (!%p316_p9)
}
  0x2a   : > { %249 = dma.hbm_to_vmem [thread:$0]  (!%p467_p13), %s463_s25, 128, %s471_s27, %s88_s29  }
  0x2b   : > { %p569_p0 = scmp.lt.s32.totalorder %s386_s9, 3  ;;  %p570_p1 = scmp.ge.s32.totalorder %s386_s9, 1 }
  0x2d   : > { %p104_p3 = pnand %p570_p1, %p569_p0 }
  0x2e   : > { %s505_s21 = sand.u32 (!%p104_p3), 1, %s378_s7  }
  0x2f   : > { %107 = sbr.rel (%p104_p3) target bundleno = 85 (0x55), region = 24  ;;  %s236_s22 = sshll.u32 (!%p104_p3), %s505_s21, 3 }
  0x30   : > { %s110_s23 = scalar_lea.sflag (!%p104_p3), [#allocation3], %s505_s21  ;;  %s113_s24 = scalar_lea.vmem (!%p104_p3), [#allocation2], %s236_s22 }
  0x36   : > { %365 = dma.done.wait (%p443_p6), %s110_s23, 128  }
  0x37   : > { %367 = vsyncadd (%p443_p6), %s110_s23, 4294967168  ;;  %v132_v0 = vld [vmem:[%s113_s24] sm:$0xff]  ;;  %s131_s25 = scalar_lea.vmem [#allocation5], %s236_s22  ;;  %s239_s27 = sshll.u32 %s421_s10, 7 }
  0x38   : > { %v133_v1 = vmul.f32 0.2, %v132_v0  ;;  %s160_s26 = sshll.u32 %s131_s25, 4  ;;  %s519_s29 = scalar_lea.hbm %s562_s1, %s239_s27  ;;  %s514_s26 = int_to_ptr.vmem [resolvable:$true] %s160_s26 }
  0x39   : > { %s147_s30 = scalar_lea.sflag [#allocation4], %s505_s21  ;;  %s320_s2 = scalar_lea.vmem %s514_s26, 128 }
  0x3a   : > { %v134_v2 = vmul.f32 %v133_v1, %v133_v1  ;;  %v137_v3 = vmul.f32 -21.0, %v133_v1  ;;  %288 = vrcp.f32 %v133_v1  ;;  %p321_p6 = scmp.ne.s32.totalorder %s514_s26, %s320_s2  ;;  %p571_p11 = scmp.ne.s32.totalorder %s566_s18, 0 }
  0x3b   : > { %s389_s10 = smov [#allocation5]  }
  0x3c   : > { %v135_v4 = vmul.f32 %v134_v2, %v134_v2  ;;  %v138_v5 = vadd.f32 48.0, %v137_v3  ;;  %p322_p12 = pnand %p321_p6, %p571_p11  ;;  %s324_s3 = sshll.u32 %s389_s10, 4  ;;  %s325_s3 = int_to_ptr.vmem [resolvable:$false] %s324_s3 }
  0x3d   : > { %s326_s4 = scalar_lea.vmem %s325_s3, 256  ;;  %p327_p7 = scmp.lt.s32.totalorder %s514_s26, %s325_s3 }
  0x3e   : > { %v136_v6 = vmul.f32 %v135_v4, %v133_v1  ;;  %v139_v7 = vmul.f32 %v138_v5, %v133_v1  ;;  %p323_p13 = pneg %p322_p12  ;;  %p328_p10 = scmp.lt.s32.totalorder %s326_s4, %s320_s2 }
  0x40   : > { %v140_v8 = vadd.f32 -28.0, %v139_v7  ;;  %p329_p2 = por %p328_p10, %p327_p7 }
  0x42   : > { %v141_v9 = vmul.f32 %v140_v8, %v136_v6  ;;  %p330_p4 = pnand %p329_p2, %p323_p13 }
  0x44   : > { %v289_v10 = vpop.eup %288 }
  0x45   : > { %v144_v11 = vadd.f32 %v289_v10, %v141_v9 }
  0x47   : > { %145 = vst [vmem:[%s131_s25] sm:$0xff] %v144_v11 }
  0x48   : > { %333 = shalt.err (!%p330_p4)
}
  0x49   : > { %s334_s5 = scalar_lea.hbm %s519_s29, 128  ;;  %s338_s14 = scalar_lea.hbm %s562_s1, 256 }
  0x4a   : > { %p335_p5 = scmp.ne.s32.totalorder %s519_s29, %s334_s5  ;;  %p339_p0 = scmp.lt.u32.totalorder %s519_s29, %s562_s1 }
  0x4b   : > { %p340_p1 = scmp.lt.u32.totalorder %s338_s14, %s334_s5  ;;  %p342_p6 = scmp.lt.u32.totalorder %s334_s5, %s519_s29 }
  0x4c   : > { %p336_p8 = pnand %p335_p5, %p571_p11 }
  0x4d   : > { %p341_p3 = por %p340_p1, %p339_p0 }
  0x4e   : > { %p337_p9 = pneg %p336_p8 }
  0x4f   : > { %p343_p12 = por %p342_p6, %p341_p3 }
  0x51   : > { %p344_p13 = pnand %p343_p12, %p337_p9 }
  0x53   : > { %347 = shalt.err (!%p344_p13)
}
  0x54   : > { %244 = dma.vmem_to_hbm [thread:$0]  (%p571_p11), %s514_s26, 128, %s519_s29, %s147_s30  }
  0x55 PF: > { %s172_s21 = sand.u32 1, %s374_s6   ;;  %p572_p7 = scmp.ne.s32.totalorder %s567_s19, 0 }
  0x56   : > { %p573_p10 = scmp.ge.s32.totalorder %s386_s9, 2  ;;  %s173_s22 = scalar_lea.sflag [#allocation4], %s172_s21 }
  0x58   : > { %p251_p2 = pnand %p573_p10, %p572_p7 }
  0x5a   : > { %369 = dma.done.wait (!%p251_p2), %s173_s22, 128  }
  0x5b   : > { %371 = vsyncadd (!%p251_p2), %s173_s22, 4294967168  ;;  %p14_p4 = scmp.ge.s32.totalorder %s425_s12, 4   ;;  %s574_s6 = smov %s378_s7 }
  0x5c   : > { %s575_s7 = smov %s382_s8  ;;  %s576_s8 = smov %s437_s15 }
  0x5d   : > { %s577_s9 = smov %s425_s12  ;;  %16 = sbr.rel (!%p14_p4) target bundleno = 5 (0x5), region = 69 }
  0x64   :  { %178 = vsyncpa [#allocation3], 1 }
  0x65   :  { %180 = vsyncpa [#allocation3 + $0x1], 1 }
  0x66   :  { %181 = vsyncpa [#allocation4], 1 }
  0x67   :  { %183 = vsyncpa [#allocation4 + $0x1], 1 }

</bundles_post_ra>
